<compile_context>
chip_gen: v5e
topology: v5e:2x2
jax: 0.10.0
libtpu: 0.0.40
codegen_flags: <defaults>
</compile_context>

<pallas_src>
import math

import jax
import jax.numpy as jnp
from jax.experimental import pallas as pl
from jax.experimental.pallas import tpu as pltpu


def _ceil_to(a: int, b: int) -> int:
    return -(-a // b) * b


def _split_linear_kernel(x_ref, w_ref, b_ref, o_ref, acc_ref):
    # x_ref: (tm, tk)  w_ref: (tk, tn)  b_ref: (1, tn)  o_ref: (tm, tn)
    # acc_ref: VMEM (tm, tn) f32 scratch, resident across the K grid axis.
    k = pl.program_id(2)

    @pl.when(k == 0)
    def _init():
        acc_ref[...] = jnp.zeros_like(acc_ref)

    acc_ref[...] += jnp.dot(
        x_ref[...], w_ref[...], preferred_element_type=jnp.float32
    )

    @pl.when(k == pl.num_programs(2) - 1)
    def _finalize():
        out = acc_ref[...] + b_ref[...].astype(jnp.float32)
        o_ref[...] = out.astype(o_ref.dtype)


def split_linear(x, weights, biases=None, *,
                 tm_target=256, tn_target=256, tk_target=512):
    """SplitLinear forward.

    x:       (..., in_features)
    weights: (n_split, t, in_features)  -- stacked torch Linear weight chunks
    biases:  (n_split, t) or None
    returns: (..., n_split * t)  ==  cat_s [ x @ W_s^T + b_s ]
    """
    n_split, t, K = weights.shape
    N = n_split * t
    lead = x.shape[:-1]
    M = math.prod(lead) if lead else 1
    out_dtype = x.dtype

    # cat_s F.linear(x, W_s, b_s) == x @ W^T + b with W the stacked chunks.
    # Fuse splits so the per-step output tile can be >= 256 lanes and
    # pre-transpose once so the kernel never does w.T on a VMEM tile.
    w_full = weights.reshape(N, K)            # torch layout (out, in)
    w_t = jnp.transpose(w_full, (1, 0))       # (K, N) for the MXU
    if biases is None:
        b2 = jnp.zeros((1, N), dtype=jnp.float32)
    else:
        b2 = biases.reshape(1, N)

    x2 = x.reshape(M, K)

    # ---- tile sizes: (8, 128)-aligned, bounded VMEM on all generations ----
    if M >= tm_target:
        tm = tm_target
        M_pad = _ceil_to(M, tm)
    else:
        tm = _ceil_to(max(M, 1), 8)
        M_pad = tm

    if K > tk_target:
        tk = tk_target                        # multiple of 128
        K_pad = _ceil_to(K, tk)
    else:
        tk = K                                # single K tile == full dim
        K_pad = K

    if N > tn_target:
        tn = tn_target                        # multiple of 128 (lane-dense out)
        N_pad = _ceil_to(N, tn)
    else:
        tn = N                                # single N tile == full dim
        N_pad = N

    # Zero padding is numerically inert for matmul + bias add.
    if (M_pad, K_pad) != (M, K):
        x2 = jnp.pad(x2, ((0, M_pad - M), (0, K_pad - K)))
    if (K_pad, N_pad) != (K, N):
        w_t = jnp.pad(w_t, ((0, K_pad - K), (0, N_pad - N)))
    if N_pad != N:
        b2 = jnp.pad(b2, ((0, 0), (0, N_pad - N)))

    grid = (M_pad // tm, N_pad // tn, K_pad // tk)

    x_bytes = M_pad * K_pad * jnp.dtype(x2.dtype).itemsize
    w_bytes = K_pad * N_pad * jnp.dtype(w_t.dtype).itemsize
    b_bytes = N_pad * jnp.dtype(b2.dtype).itemsize
    o_bytes = M_pad * N_pad * jnp.dtype(out_dtype).itemsize
    cost = pl.CostEstimate(
        flops=2 * M_pad * K_pad * N_pad,
        transcendentals=0,
        bytes_accessed=x_bytes + w_bytes + b_bytes + o_bytes,
    )

    out = pl.pallas_call(
        _split_linear_kernel,
        out_shape=jax.ShapeDtypeStruct((M_pad, N_pad), out_dtype),
        grid_spec=pltpu.PrefetchScalarGridSpec(
            num_scalar_prefetch=0,
            grid=grid,
            in_specs=[
                # activation tile: varies with (m, k); resident across n
                pl.BlockSpec((tm, tk), lambda m, n, k: (m, k)),
                # pre-transposed weight tile: streamed over (k, n)
                pl.BlockSpec((tk, tn), lambda m, n, k: (k, n)),
                # bias tile: depends only on n
                pl.BlockSpec((1, tn), lambda m, n, k: (0, n)),
            ],
            out_specs=pl.BlockSpec((tm, tn), lambda m, n, k: (m, n)),
            scratch_shapes=[pltpu.VMEM((tm, tn), jnp.float32)],
        ),
        compiler_params=pltpu.CompilerParams(
            dimension_semantics=("parallel", "parallel", "arbitrary"),
            vmem_limit_bytes=48 * 1024 * 1024,  # > 32 MiB default, < v7x 64 MiB
        ),
        cost_estimate=cost,
    )(x2, w_t, b2)

    out = out[:M, :N]
    return out.reshape(*lead, N)


if __name__ == "__main__":
    # Small shapes consistent with the module: nn.Linear(128, 256) split into
    # n_split=2 chunks of t=128, applied to a (batch=2, seq=8, 128) input.
    batch, seq = 2, 8
    in_features, out_features, n_split = 128, 256, 2
    t = out_features // n_split

    key = jax.random.PRNGKey(0)
    kx, kw, kb = jax.random.split(key, 3)

    x = jax.random.normal(kx, (batch, seq, in_features), dtype=jnp.float32)
    # Deterministic "checkpoint": full Linear weight (out, in) and bias (out,)
    w_full = jax.random.normal(kw, (out_features, in_features), dtype=jnp.float32) * 0.05
    b_full = jax.random.normal(kb, (out_features,), dtype=jnp.float32) * 0.05

    # Exactly weight.split(t, dim=0) stacked, and bias.split(t, dim=0) stacked.
    weights = w_full.reshape(n_split, t, in_features)
    biases = b_full.reshape(n_split, t)

    y = split_linear(x, weights, biases)
    y = jax.block_until_ready(y)

    # Reference: torch.cat([F.linear(x, w_s, b_s) for ...], dim=-1) == x @ W^T + b
    y_ref = jnp.einsum("bsk,nk->bsn", x, w_full) + b_full
    assert y.shape == (batch, seq, out_features)
    assert jnp.allclose(y, y_ref, atol=1e-4, rtol=1e-4), float(
        jnp.max(jnp.abs(y - y_ref))
    )

    print("KERNEL_OK")
</pallas_src>

<mosaic_0001>
module attributes {stable_mosaic.version = 11 : i64} {
  func.func @_split_linear_kernel(%arg0: i32, %arg1: i32, %arg2: i32, %arg3: memref<16x128xf32, #tpu.memory_space<vmem>>, %arg4: memref<128x256xf32, #tpu.memory_space<vmem>>, %arg5: memref<1x256xf32, #tpu.memory_space<vmem>>, %arg6: memref<16x256xf32, #tpu.memory_space<vmem>>, %arg7: memref<16x256xf32, #tpu.memory_space<vmem>>) attributes {dimension_semantics = [#tpu.dimension_semantics<parallel>, #tpu.dimension_semantics<parallel>, #tpu.dimension_semantics<arbitrary>], iteration_bounds = array<i64: 1, 1, 1>, scalar_prefetch = 0 : i64, scratch_operands = 1 : i64, tpu.core_type = #tpu.core_type<tc>, window_params = [{transform_indices = @transform_0, window_bounds = array<i64: 16, 128>}, {transform_indices = @transform_1, window_bounds = array<i64: 128, 256>}, {transform_indices = @transform_2, window_bounds = array<i64: 1, 256>}, {transform_indices = @transform_3, window_bounds = array<i64: 16, 256>}]} {
    %c0_i32 = arith.constant 0 : i32
    %0 = arith.cmpi eq, %arg2, %c0_i32 : i32
    %1 = arith.extui %0 : i1 to i32
    %c0_i32_0 = arith.constant 0 : i32
    %2 = arith.cmpi ne, %1, %c0_i32_0 : i32
    scf.if %2 {
      %cst_10 = arith.constant 0.000000e+00 : f32
      %12 = vector.broadcast %cst_10 : f32 to vector<16x256xf32>
      %c0_11 = arith.constant 0 : index
      %c0_12 = arith.constant 0 : index
      %13 = vector.load %arg7[%c0_11, %c0_12] : memref<16x256xf32, #tpu.memory_space<vmem>>, vector<16x256xf32>
      tpu.vector_store %arg7[%c0_11, %c0_12], %12 {strides = array<i32>} : memref<16x256xf32, #tpu.memory_space<vmem>>, vector<16x256xf32>,
    } else {
    }
    %c0 = arith.constant 0 : index
    %c0_1 = arith.constant 0 : index
    %3 = vector.load %arg7[%c0, %c0_1] : memref<16x256xf32, #tpu.memory_space<vmem>>, vector<16x256xf32>
    %c0_2 = arith.constant 0 : index
    %c0_3 = arith.constant 0 : index
    %4 = vector.load %arg3[%c0_2, %c0_3] : memref<16x128xf32, #tpu.memory_space<vmem>>, vector<16x128xf32>
    %c0_4 = arith.constant 0 : index
    %c0_5 = arith.constant 0 : index
    %5 = vector.load %arg4[%c0_4, %c0_5] : memref<128x256xf32, #tpu.memory_space<vmem>>, vector<128x256xf32>
    %cst = arith.constant dense<0.000000e+00> : vector<16x256xf32>
    %6 = tpu.matmul %4, %5, %cst {dimension_numbers = #tpu.dot_dimension_numbers<[1], [0], [0], [1], [0, 0, 1, 1], [], []>} : vector<16x128xf32>, vector<128x256xf32>, vector<16x256xf32> -> vector<16x256xf32>
    %7 = arith.addf %3, %6 : vector<16x256xf32>
    %c0_6 = arith.constant 0 : index
    %c0_7 = arith.constant 0 : index
    %8 = vector.load %arg7[%c0_6, %c0_7] : memref<16x256xf32, #tpu.memory_space<vmem>>, vector<16x256xf32>
    tpu.vector_store %arg7[%c0_6, %c0_7], %7 {strides = array<i32>} : memref<16x256xf32, #tpu.memory_space<vmem>>, vector<16x256xf32>,
    %c0_i32_8 = arith.constant 0 : i32
    %9 = arith.cmpi eq, %arg2, %c0_i32_8 : i32
    %10 = arith.extui %9 : i1 to i32
    %c0_i32_9 = arith.constant 0 : i32
    %11 = arith.cmpi ne, %10, %c0_i32_9 : i32
    scf.if %11 {
      %c0_10 = arith.constant 0 : index
      %c0_11 = arith.constant 0 : index
      %12 = vector.load %arg7[%c0_10, %c0_11] : memref<16x256xf32, #tpu.memory_space<vmem>>, vector<16x256xf32>
      %c0_12 = arith.constant 0 : index
      %c0_13 = arith.constant 0 : index
      %13 = vector.load %arg5[%c0_12, %c0_13] : memref<1x256xf32, #tpu.memory_space<vmem>>, vector<1x256xf32>
      %14 = vector.broadcast %13 : vector<1x256xf32> to vector<16x256xf32>
      %15 = arith.addf %12, %14 : vector<16x256xf32>
      %c0_14 = arith.constant 0 : index
      %c0_15 = arith.constant 0 : index
      %16 = vector.load %arg6[%c0_14, %c0_15] : memref<16x256xf32, #tpu.memory_space<vmem>>, vector<16x256xf32>
      tpu.vector_store %arg6[%c0_14, %c0_15], %15 {strides = array<i32>} : memref<16x256xf32, #tpu.memory_space<vmem>>, vector<16x256xf32>,
    } else {
    }
    return
  }
  func.func @transform_0(%arg0: i32, %arg1: i32, %arg2: i32) -> (i32, i32) {
    %c0_i32 = arith.constant 0 : i32
    return %arg0, %arg2 : i32, i32
  }
  func.func @transform_1(%arg0: i32, %arg1: i32, %arg2: i32) -> (i32, i32) {
    %c0_i32 = arith.constant 0 : i32
    return %arg2, %arg1 : i32, i32
  }
  func.func @transform_2(%arg0: i32, %arg1: i32, %arg2: i32) -> (i32, i32) {
    %c0_i32 = arith.constant 0 : i32
    %c0_i32_0 = arith.constant 0 : i32
    return %c0_i32, %arg1 : i32, i32
  }
  func.func @transform_3(%arg0: i32, %arg1: i32, %arg2: i32) -> (i32, i32) {
    %c0_i32 = arith.constant 0 : i32
    return %arg0, %arg1 : i32, i32
  }
}

</mosaic_0001>

<bundles_post_ra>
// kernel: tpu_custom_call.1
= control target key start
LH: loop header
LB: loop body
LE: loop exit
PB: predicated region body
PF: predicated region fallthrough
CT: control target
= control target key end

     0   :  { %8 = vsyncpa [#allocation4], 0  ;;  %s389_s0 = inlined_call_operand.hbm [shape: f32[16,128], index: 0, kind: input, shape index: {}]   ;;  %s390_s1 = inlined_call_operand.hbm [shape: f32[128,256], index: 1, kind: input, shape index: {}]   ;;  %s391_s2 = inlined_call_operand.hbm [shape: f32[1,256], index: 2, kind: input, shape index: {}]   ;;  %s392_s3 = inlined_call_operand.hbm [shape: f32[16,256], index: 3, kind: output, shape index: {}]  }
   0x1   :  { %9 = vsyncpa [#allocation7], 0  ;;  %s28_s14 = sshll.u32 %s390_s1, 4  ;;  %s29_s14 = int_to_ptr.hbm [resolvable:$true] %s28_s14 }
   0x2   :  { %10 = vsyncpa [#allocation5], 0  ;;  %s343_s15 = smov [#allocation6]   ;;  %s15_s19 = sshll.u32 %s389_s0, 4  ;;  %s16_s19 = int_to_ptr.hbm [resolvable:$true] %s15_s19 }
   0x3   :  { %s30_s16 = sshll.u32 %s343_s15, 4  ;;  %s344_s20 = smov 256   ;;  %s31_s16 = int_to_ptr.vmem [resolvable:$true] %s30_s16 }
   0x4   :  { %s345_s21 = smov 16   ;;  %s346_s22 = smov [#allocation3]  }
   0x5   :  { %36 = dma.hbm_to_vmem [thread:$0]  %s29_s14, 4096, %s31_s16, [#allocation7], %s344_s20, %s344_s20, %s345_s21  }
   0x6   :  { %s17_s23 = sshll.u32 %s346_s22, 4  ;;  %s347_s1 = smov 128   ;;  %s18_s23 = int_to_ptr.vmem [resolvable:$true] %s17_s23 }
   0x7   :  { %s348_s24 = smov 8   ;;  %s42_s27 = sshll.u32 %s391_s2, 4  ;;  %s43_s27 = int_to_ptr.hbm [resolvable:$true] %s42_s27 }
   0x8   :  { %23 = dma.hbm_to_vmem [thread:$0]  %s16_s19, 256, %s18_s23, [#allocation4], %s347_s1, %s347_s1, %s348_s24  }
   0x9   :  { %s349_s28 = smov [#allocation8]  }
   0xa   :  { %s44_s0 = sshll.u32 %s349_s28, 4  ;;  %s45_s0 = int_to_ptr.vmem [resolvable:$true] %s44_s0 }
   0xb   :  { %47 = dma.hbm_to_vmem [thread:$0]  %s43_s27, 32, %s45_s0, [#allocation7]  }
   0xc   :  { %337 = dma.done.wait [#allocation4], 256  }
   0xd   :  { %338 = vsyncadd [#allocation4], 4294967040 }
   0xe   :  { %339 = dma.done.wait [#allocation7], 4128  }
   0xf   :  { %340 = vsyncadd [#allocation7], 4294963168  ;;  %v104_v0 = vld [vmem:[#allocation6 + $0xf0] sm:$0xff]  ;;  %v105_v1 = vld [vmem:[#allocation6 + $0xf8] sm:$0xff]  ;;  %s350_s2 = smov [#allocation9]   ;;  %s187_s5 = sshll.u32 %s392_s3, 4  ;;  %s188_s5 = int_to_ptr.hbm [resolvable:$true] %s187_s5 }
  0x10   :  { %v102_v2 = vld [vmem:[#allocation6 + $0xe0] sm:$0xff]  ;;  %201 = vmatpush.msra.mxu2 %v104_v0  ;;  %217 = vmatpush.msra.mxu3 %v105_v1  ;;  %v103_v3 = vld [vmem:[#allocation6 + $0xe8] sm:$0xff]  ;;  %v100_v4 = vld [vmem:[#allocation6 + $0xd0] sm:$0xff]  ;;  %s185_s29 = sshll.u32 %s350_s2, 4  ;;  %s186_s29 = int_to_ptr.vmem [resolvable:$true] %s185_s29 }
  0x11   :  { %v101_v5 = vld [vmem:[#allocation6 + $0xd8] sm:$0xff]  ;;  %106 = vmatpush.msra.mxu0 %v104_v0  ;;  %129 = vmatpush.msra.mxu1 %v105_v1  ;;  %v98_v6 = vld [vmem:[#allocation6 + $0xc0] sm:$0xff]  ;;  %v99_v7 = vld [vmem:[#allocation6 + $0xc8] sm:$0xff] }
  0x12   :  { %202 = vmatpush.msra.mxu2 %v102_v2  ;;  %218 = vmatpush.msra.mxu3 %v103_v3  ;;  %v96_v8 = vld [vmem:[#allocation6 + $0xb0] sm:$0xff]  ;;  %v97_v9 = vld [vmem:[#allocation6 + $0xb8] sm:$0xff]  ;;  %v94_v10 = vld [vmem:[#allocation6 + $0xa0] sm:$0xff] }
  0x13   :  { %107 = vmatpush.msra.mxu0 %v102_v2  ;;  %130 = vmatpush.msra.mxu1 %v103_v3  ;;  %v95_v11 = vld [vmem:[#allocation6 + $0xa8] sm:$0xff]  ;;  %v92_v12 = vld [vmem:[#allocation6 + $0x90] sm:$0xff]  ;;  %v93_v13 = vld [vmem:[#allocation6 + $0x98] sm:$0xff] }
  0x14   :  { %203 = vmatpush.msra.mxu2 %v100_v4  ;;  %219 = vmatpush.msra.mxu3 %v101_v5  ;;  %v90_v14 = vld [vmem:[#allocation6 + $0x80] sm:$0xff]  ;;  %v91_v15 = vld [vmem:[#allocation6 + $0x88] sm:$0xff]  ;;  %v88_v16 = vld [vmem:[#allocation6 + $0x70] sm:$0xff] }
  0x15   :  { %108 = vmatpush.msra.mxu0 %v100_v4  ;;  %131 = vmatpush.msra.mxu1 %v101_v5  ;;  %v89_v17 = vld [vmem:[#allocation6 + $0x78] sm:$0xff]  ;;  %v86_v18 = vld [vmem:[#allocation6 + $0x60] sm:$0xff]  ;;  %v87_v19 = vld [vmem:[#allocation6 + $0x68] sm:$0xff] }
  0x16   :  { %204 = vmatpush.msra.mxu2 %v98_v6  ;;  %220 = vmatpush.msra.mxu3 %v99_v7  ;;  %v84_v20 = vld [vmem:[#allocation6 + $0x50] sm:$0xff]  ;;  %v85_v21 = vld [vmem:[#allocation6 + $0x58] sm:$0xff]  ;;  %v82_v22 = vld [vmem:[#allocation6 + $0x40] sm:$0xff] }
  0x17   :  { %109 = vmatpush.msra.mxu0 %v98_v6  ;;  %132 = vmatpush.msra.mxu1 %v99_v7  ;;  %v83_v23 = vld [vmem:[#allocation6 + $0x48] sm:$0xff]  ;;  %v80_v24 = vld [vmem:[#allocation6 + $0x30] sm:$0xff]  ;;  %v81_v25 = vld [vmem:[#allocation6 + $0x38] sm:$0xff] }
  0x18   :  { %205 = vmatpush.msra.mxu2 %v96_v8  ;;  %221 = vmatpush.msra.mxu3 %v97_v9  ;;  %v78_v26 = vld [vmem:[#allocation6 + $0x20] sm:$0xff]  ;;  %v79_v27 = vld [vmem:[#allocation6 + $0x28] sm:$0xff]  ;;  %v76_v28 = vld [vmem:[#allocation6 + $0x10] sm:$0xff] }
  0x19   :  { %110 = vmatpush.msra.mxu0 %v96_v8  ;;  %133 = vmatpush.msra.mxu1 %v97_v9  ;;  %v77_v29 = vld [vmem:[#allocation6 + $0x18] sm:$0xff]  ;;  %v74_v30 = vld [vmem:[#allocation6] sm:$0xff]  ;;  %v75_v31 = vld [vmem:[#allocation6 + $0x8] sm:$0xff] }
  0x1a   :  { %206 = vmatpush.msra.mxu2 %v94_v10  ;;  %222 = vmatpush.msra.mxu3 %v95_v11  ;;  %v73_v32 = vld [vmem:[#allocation3 + $0x8] sm:$0xff]  ;;  %v72_v33 = vld [vmem:[#allocation3] sm:$0xff]  ;;  %v167_v34 = vld [vmem:[#allocation8] sm:$0x3] }
  0x1b   :  { %111 = vmatpush.msra.mxu0 %v94_v10  ;;  %134 = vmatpush.msra.mxu1 %v95_v11  ;;  %v169_v35 = vperm.slane %v167_v34, 0  ;;  %v170_v36 = vperm.slane %v167_v34, 1 }
  0x1c   :  { %207 = vmatpush.msra.mxu2 %v92_v12  ;;  %223 = vmatpush.msra.mxu3 %v93_v13 }
  0x1d   :  { %112 = vmatpush.msra.mxu0 %v92_v12  ;;  %135 = vmatpush.msra.mxu1 %v93_v13 }
  0x1e   :  { %208 = vmatpush.msra.mxu2 %v90_v14  ;;  %224 = vmatpush.msra.mxu3 %v91_v15 }
  0x1f   :  { %113 = vmatpush.msra.mxu0 %v90_v14  ;;  %136 = vmatpush.msra.mxu1 %v91_v15 }
  0x20   :  { %209 = vmatpush.msra.mxu2 %v88_v16  ;;  %225 = vmatpush.msra.mxu3 %v89_v17 }
  0x21   :  { %114 = vmatpush.msra.mxu0 %v88_v16  ;;  %137 = vmatpush.msra.mxu1 %v89_v17 }
  0x22   :  { %210 = vmatpush.msra.mxu2 %v86_v18  ;;  %226 = vmatpush.msra.mxu3 %v87_v19 }
  0x23   :  { %115 = vmatpush.msra.mxu0 %v86_v18  ;;  %138 = vmatpush.msra.mxu1 %v87_v19 }
  0x24   :  { %211 = vmatpush.msra.mxu2 %v84_v20  ;;  %227 = vmatpush.msra.mxu3 %v85_v21 }
  0x25   :  { %116 = vmatpush.msra.mxu0 %v84_v20  ;;  %139 = vmatpush.msra.mxu1 %v85_v21 }
  0x26   :  { %212 = vmatpush.msra.mxu2 %v82_v22  ;;  %228 = vmatpush.msra.mxu3 %v83_v23 }
  0x27   :  { %117 = vmatpush.msra.mxu0 %v82_v22  ;;  %140 = vmatpush.msra.mxu1 %v83_v23 }
  0x28   :  { %213 = vmatpush.msra.mxu2 %v80_v24  ;;  %229 = vmatpush.msra.mxu3 %v81_v25 }
  0x29   :  { %118 = vmatpush.msra.mxu0 %v80_v24  ;;  %141 = vmatpush.msra.mxu1 %v81_v25 }
  0x2a   :  { %214 = vmatpush.msra.mxu2 %v78_v26  ;;  %230 = vmatpush.msra.mxu3 %v79_v27 }
  0x2b   :  { %119 = vmatpush.msra.mxu0 %v78_v26  ;;  %142 = vmatpush.msra.mxu1 %v79_v27 }
  0x2c   :  { %215 = vmatpush.msra.mxu2 %v76_v28  ;;  %231 = vmatpush.msra.mxu3 %v77_v29 }
  0x2d   :  { %120 = vmatpush.msra.mxu0 %v76_v28  ;;  %143 = vmatpush.msra.mxu1 %v77_v29 }
  0x2e   :  { %216 = vmatpush.msra.mxu2 %v74_v30  ;;  %232 = vmatpush.msra.mxu3 %v75_v31 }
  0x2f   :  { %125 = vmatmul.f32.vlgmr.msra.gmra.mxu2 %v73_v32  ;;  %148 = vmatmul.f32.vlgmr.msra.gmra.mxu3 %v73_v32 }
  0x30   :  { %121 = vmatpush.msra.mxu0 %v74_v30  ;;  %144 = vmatpush.msra.mxu1 %v75_v31 }
  0x31   :  { %122 = vmatmul.f32.vlgmr.msra.gmra.mxu0 %v72_v33  ;;  %145 = vmatmul.f32.vlgmr.msra.gmra.mxu1 %v72_v33 }
  0xae   :  { %v123_v37 = vpop.f32.mrf.mxu0  ;;  %v146_v38 = vpop.f32.mrf.mxu1 }
  0xaf   :  { %v173_v39 = vadd.f32 %v169_v35, %v123_v37  ;;  %v174_v40 = vadd.f32 %v170_v36, %v146_v38 }
  0xb1   :  { %177 = vst [vmem:[#allocation9] sm:$0xff] %v173_v39 }
  0xb2   :  { %v126_v41 = vpop.f32.mrf.mxu2  ;;  %178 = vst [vmem:[#allocation9 + $0x8] sm:$0xff] %v174_v40  ;;  %v149_v42 = vpop.f32.mrf.mxu3 }
  0xb3   :  { %v175_v43 = vadd.f32 %v169_v35, %v126_v41  ;;  %v176_v44 = vadd.f32 %v170_v36, %v149_v42 }
  0xb5   :  { %179 = vst [vmem:[#allocation9 + $0x10] sm:$0xff] %v175_v43 }
  0xb6   :  { %180 = vst [vmem:[#allocation9 + $0x18] sm:$0xff] %v176_v44 }
  0xb7   :  { %193 = dma.vmem_to_hbm [thread:$0]  %s186_s29, 512, %s188_s5, [#allocation5], %s344_s20, %s344_s20, %s345_s21  }
  0xb8   :  { %341 = dma.done.wait [#allocation5], 512  }
  0xb9   :  { %342 = vsyncadd [#allocation5], 4294966784 }
  0xba   :  { %198 = vsyncpa [#allocation4], 1 }
  0xbb   :  { %199 = vsyncpa [#allocation7], 1 }
  0xbc   :  { %200 = vsyncpa [#allocation5], 1 }

</bundles_post_ra>
